<compile_context>
chip_gen: v7x
topology: tpu7x:2x2x1
jax: 0.10.0
libtpu: 0.0.40
codegen_flags: <defaults>
</compile_context>

<pallas_src>
import math

import jax
import jax.numpy as jnp
from jax.experimental import pallas as pl
from jax.experimental.pallas import tpu as pltpu


def _round_up(x, m):
    return ((x + m - 1) // m) * m


def _round_down(x, m):
    return (x // m) * m


def _make_kernel(num_nbr, d_in, fold_weights):
    inv_nbr = 1.0 / float(num_nbr)  # 'mean' neighbor aggregation

    if fold_weights:
        # w_agg_ref holds W_agg replicated NUM_NBR times along K (unscaled).
        def kernel(src_ref, nbr_ref, w_self_ref, w_agg_ref, out_ref):
            self_hidden = jnp.dot(src_ref[...], w_self_ref[...],
                                  preferred_element_type=jnp.float32)
            neighbor_hidden = jnp.dot(nbr_ref[...], w_agg_ref[...],
                                      preferred_element_type=jnp.float32)
            hidden = self_hidden + neighbor_hidden * inv_nbr  # 'sum' combine
            out_ref[...] = jnp.maximum(hidden, 0.0).astype(out_ref.dtype)  # relu
    else:
        # Large-shape path: VPU lane-group sum over the NUM_NBR groups
        # (D_in is a multiple of 128 lanes here), then a single
        # (tile_n, D_in) @ (D_in, D_h) MXU matmul with the plain weight.
        def kernel(src_ref, nbr_ref, w_self_ref, w_agg_ref, out_ref):
            self_hidden = jnp.dot(src_ref[...], w_self_ref[...],
                                  preferred_element_type=jnp.float32)
            acc = nbr_ref[:, 0:d_in]
            for k in range(1, num_nbr):
                acc = acc + nbr_ref[:, k * d_in:(k + 1) * d_in]
            neighbor_hidden = jnp.dot(acc, w_agg_ref[...],
                                      preferred_element_type=jnp.float32)
            hidden = self_hidden + neighbor_hidden * inv_nbr
            out_ref[...] = jnp.maximum(hidden, 0.0).astype(out_ref.dtype)

    return kernel


def sage_gcn_forward(src, nbr, w_self, w_agg, *, tile_n=None,
                     feature_dtype=jnp.bfloat16):
    """SageGCN forward (mean neighbor agg, 'sum' combine, relu).

    src:    (N, D_in)          source node features
    nbr:    (N, NUM_NBR, D_in) sampled neighbor features
    w_self: (D_in, D_h)        SageGCN.weight
    w_agg:  (D_in, D_h)        NeighborAggregator.weight
    """
    N, d_in = src.shape
    num_nbr = nbr.shape[1]
    d_h = w_self.shape[1]
    out_dtype = src.dtype
    k_nbr = num_nbr * d_in

    feature_dtype = jnp.dtype(feature_dtype)
    bpe = feature_dtype.itemsize
    # Sublane packing alignment: 8 for f32, 16 for bf16, 32 for int8/fp8.
    sublane = max(8, 32 // bpe)

    # ---- hardware query: VMEM capacity drives tile sizing + vmem limit ------
    try:
        vmem_cap = int(pltpu.get_tpu_info().vmem_capacity_bytes)
    except Exception:
        vmem_cap = 64 << 20                       # conservative (v7x) fallback
    vmem_limit = int(0.75 * vmem_cap)             # ~48 MiB v7x, ~96 MiB v5e/v6e

    # ---- generation-sized node tiles -----------------------------------------
    if tile_n is None:
        # Target neighbor-slab DMA bytes per grid step (bf16 doubles the rows
        # automatically since the target is in bytes).
        target_bytes = (4 << 20) if vmem_cap <= (64 << 20) else (2 << 20)
        tile_n = max(sublane,
                     _round_down(max(target_bytes // (k_nbr * bpe), sublane),
                                 sublane))
    # Keep >= 4 grid steps when N allows, so each v7x core gets >= 2 pipelined
    # steps (with only 1 step/core the prologue/epilogue DMAs are fully exposed).
    min_steps = 4
    if N >= min_steps * sublane:
        tile_n = min(tile_n, _round_down(N // min_steps, sublane))
    tile_n = max(sublane, min(tile_n, _round_up(N, sublane)))

    # ---- scaling guard: fold mean into replicated weight only while cheap ----
    fold_weights = (d_in % 128 != 0) or (k_nbr * d_h * bpe <= (2 << 20))
    w_agg_rows = k_nbr if fold_weights else d_in

    # ---- VMEM budget check (shrink tile if ever needed) ----------------------
    def _vmem_need(tn):
        lanes = lambda x: _round_up(x, 128)
        return (2 * tn * lanes(d_in) * bpe                           # src  (x2 bufs)
                + 2 * tn * lanes(k_nbr) * bpe                        # nbr  (x2 bufs)
                + 2 * tn * lanes(d_h) * jnp.dtype(out_dtype).itemsize  # out (x2 bufs)
                + (d_in + w_agg_rows) * lanes(d_h) * bpe)            # weights (x1)

    while tile_n > sublane and _vmem_need(tile_n) > int(0.6 * vmem_limit):
        tile_n = max(sublane, _round_down(tile_n // 2, sublane))

    # ---- lane-dense bf16 feature streams + resident weights ------------------
    nbr_flat = nbr.reshape(N, k_nbr)              # free row-major reshape
    src_c = src.astype(feature_dtype)
    nbr_c = nbr_flat.astype(feature_dtype)
    w_self_c = w_self.astype(feature_dtype)
    if fold_weights:
        # Exact replication (no 1/NUM_NBR pre-scale -> no extra quantization).
        w_agg_c = jnp.tile(w_agg.astype(feature_dtype), (num_nbr, 1))
    else:
        w_agg_c = w_agg.astype(feature_dtype)

    # Pad node axis so every tile is full; padded rows relu to 0, sliced off.
    n_pad = (-N) % tile_n
    if n_pad:
        src_c = jnp.pad(src_c, ((0, n_pad), (0, 0)))
        nbr_c = jnp.pad(nbr_c, ((0, n_pad), (0, 0)))
    n_total = N + n_pad
    grid = (n_total // tile_n,)

    def _weight_spec(shape):
        index_map = lambda i: (0, 0)
        if hasattr(pl, "Buffered"):
            try:
                # Constant-index blocks never re-DMA: single-buffer them.
                return pl.BlockSpec(shape, index_map, pipeline_mode=pl.Buffered(1))
            except TypeError:
                pass
        return pl.BlockSpec(shape, index_map)

    kernel = _make_kernel(num_nbr, d_in, fold_weights)

    out = pl.pallas_call(
        kernel,
        out_shape=jax.ShapeDtypeStruct((n_total, d_h), out_dtype),
        grid_spec=pltpu.PrefetchScalarGridSpec(
            num_scalar_prefetch=0,
            grid=grid,
            in_specs=[
                pl.BlockSpec((tile_n, d_in), lambda i: (i, 0)),    # src tile
                pl.BlockSpec((tile_n, k_nbr), lambda i: (i, 0)),   # nbr slab (lane dense)
                _weight_spec((d_in, d_h)),                         # W_self   (resident)
                _weight_spec((w_agg_rows, d_h)),                   # W_agg    (resident)
            ],
            out_specs=pl.BlockSpec((tile_n, d_h), lambda i: (i, 0)),
        ),
        compiler_params=pltpu.CompilerParams(
            dimension_semantics=("parallel",),       # node axis shards across cores
            vmem_limit_bytes=vmem_limit,
        ),
    )(src_c, nbr_c, w_self_c, w_agg_c)

    return out[:N] if n_pad else out


def kaiming_uniform(key, shape, dtype=jnp.float32):
    # Matches torch.nn.init.kaiming_uniform_ defaults (a=0 -> gain=sqrt(2));
    # PyTorch's fan_in for a 2-D (input_dim, hidden_dim) tensor is shape[1]
    # (intentional reproduction of the module's quirk).
    fan_in = shape[1]
    bound = math.sqrt(6.0 / fan_in)
    return jax.random.uniform(key, shape, dtype=dtype, minval=-bound, maxval=bound)


def reference_forward(src, nbr, w_self, w_agg, quant_dtype=None):
    """Pure-JAX reference.  quant_dtype emulates the kernel's bf16 streaming."""
    def q(x):
        if quant_dtype is not None:
            return x.astype(quant_dtype).astype(jnp.float32)
        return x.astype(jnp.float32)
    hidden = q(src) @ q(w_self) + jnp.mean(q(nbr), axis=1) @ q(w_agg)
    return jnp.maximum(hidden, 0.0)


if __name__ == "__main__":
    # Small shapes consistent with the module's forward.
    N = 512          # nodes -> 4 grid steps of 128 rows (>= 2 per v7x core)
    NUM_NBR = 8      # sampled neighbors per node
    D_IN = 64        # NUM_NBR*D_IN = 512 = 4x128 lanes (lane-dense slab)
    D_HIDDEN = 32

    key = jax.random.PRNGKey(0)
    k_src, k_nbr, k_ws, k_wa = jax.random.split(key, 4)

    src = jax.random.normal(k_src, (N, D_IN), dtype=jnp.float32)
    nbr = jax.random.normal(k_nbr, (N, NUM_NBR, D_IN), dtype=jnp.float32)
    w_self = kaiming_uniform(k_ws, (D_IN, D_HIDDEN))   # SageGCN.weight
    w_agg = kaiming_uniform(k_wa, (D_IN, D_HIDDEN))    # NeighborAggregator.weight

    fwd = jax.jit(sage_gcn_forward)
    out = jax.block_until_ready(fwd(src, nbr, w_self, w_agg))
    assert out.shape == (N, D_HIDDEN)

    # Tight check vs a bf16-quantized f32 reference (same numerics as kernel),
    # loose check vs the full-f32 reference (bf16 streaming error budget).
    ref_q = reference_forward(src, nbr, w_self, w_agg, quant_dtype=jnp.bfloat16)
    ref_f = reference_forward(src, nbr, w_self, w_agg)
    assert jnp.allclose(out, ref_q, atol=5e-3, rtol=5e-3), \
        float(jnp.max(jnp.abs(out - ref_q)))
    assert jnp.allclose(out, ref_f, atol=6e-2, rtol=6e-2), \
        float(jnp.max(jnp.abs(out - ref_f)))

    print("KERNEL_OK")
</pallas_src>

<mosaic_0001>
module attributes {stable_mosaic.version = 11 : i64} {
  func.func @kernel(%arg0: i32, %arg1: memref<128x64xbf16, #tpu.memory_space<vmem>>, %arg2: memref<128x512xbf16, #tpu.memory_space<vmem>>, %arg3: memref<64x32xbf16, #tpu.memory_space<vmem>>, %arg4: memref<512x32xbf16, #tpu.memory_space<vmem>>, %arg5: memref<128x32xf32, #tpu.memory_space<vmem>>) attributes {dimension_semantics = [#tpu.dimension_semantics<parallel>], iteration_bounds = array<i64: 4>, scalar_prefetch = 0 : i64, scratch_operands = 0 : i64, tpu.core_type = #tpu.core_type<tc>, window_params = [{transform_indices = @transform_0, window_bounds = array<i64: 128, 64>}, {transform_indices = @transform_1, window_bounds = array<i64: 128, 512>}, {pipeline_mode = #tpu.pipeline_mode<synchronous>, transform_indices = @transform_2, window_bounds = array<i64: 64, 32>}, {pipeline_mode = #tpu.pipeline_mode<synchronous>, transform_indices = @transform_3, window_bounds = array<i64: 512, 32>}, {transform_indices = @transform_4, window_bounds = array<i64: 128, 32>}]} {
    %c0 = arith.constant 0 : index
    %c0_0 = arith.constant 0 : index
    %0 = vector.load %arg1[%c0, %c0_0] : memref<128x64xbf16, #tpu.memory_space<vmem>>, vector<128x64xbf16>
    %c0_1 = arith.constant 0 : index
    %c0_2 = arith.constant 0 : index
    %1 = vector.load %arg3[%c0_1, %c0_2] : memref<64x32xbf16, #tpu.memory_space<vmem>>, vector<64x32xbf16>
    %cst = arith.constant dense<0.000000e+00> : vector<128x32xf32>
    %2 = tpu.matmul %0, %1, %cst {dimension_numbers = #tpu.dot_dimension_numbers<[1], [0], [0], [1], [0, 0, 1, 1], [], []>} : vector<128x64xbf16>, vector<64x32xbf16>, vector<128x32xf32> -> vector<128x32xf32>
    %c0_3 = arith.constant 0 : index
    %c0_4 = arith.constant 0 : index
    %3 = vector.load %arg2[%c0_3, %c0_4] : memref<128x512xbf16, #tpu.memory_space<vmem>>, vector<128x512xbf16>
    %c0_5 = arith.constant 0 : index
    %c0_6 = arith.constant 0 : index
    %4 = vector.load %arg4[%c0_5, %c0_6] : memref<512x32xbf16, #tpu.memory_space<vmem>>, vector<512x32xbf16>
    %cst_7 = arith.constant dense<0.000000e+00> : vector<128x32xf32>
    %5 = tpu.matmul %3, %4, %cst_7 {dimension_numbers = #tpu.dot_dimension_numbers<[1], [0], [0], [1], [0, 0, 1, 1], [], []>} : vector<128x512xbf16>, vector<512x32xbf16>, vector<128x32xf32> -> vector<128x32xf32>
    %cst_8 = arith.constant 1.250000e-01 : f32
    %6 = vector.broadcast %cst_8 : f32 to vector<128x32xf32>
    %7 = arith.mulf %5, %6 : vector<128x32xf32>
    %8 = arith.addf %2, %7 : vector<128x32xf32>
    %cst_9 = arith.constant 0.000000e+00 : f32
    %9 = vector.broadcast %cst_9 : f32 to vector<128x32xf32>
    %10 = arith.maximumf %8, %9 : vector<128x32xf32>
    %c0_10 = arith.constant 0 : index
    %c0_11 = arith.constant 0 : index
    %11 = vector.load %arg5[%c0_10, %c0_11] : memref<128x32xf32, #tpu.memory_space<vmem>>, vector<128x32xf32>
    tpu.vector_store %arg5[%c0_10, %c0_11], %10 {strides = array<i32>} : memref<128x32xf32, #tpu.memory_space<vmem>>, vector<128x32xf32>,
    return
  }
  func.func @transform_0(%arg0: i32) -> (i32, i32) {
    %c0_i32 = arith.constant 0 : i32
    %c0_i32_0 = arith.constant 0 : i32
    return %arg0, %c0_i32 : i32, i32
  }
  func.func @transform_1(%arg0: i32) -> (i32, i32) {
    %c0_i32 = arith.constant 0 : i32
    %c0_i32_0 = arith.constant 0 : i32
    return %arg0, %c0_i32 : i32, i32
  }
  func.func @transform_2(%arg0: i32) -> (i32, i32) {
    %c0_i32 = arith.constant 0 : i32
    %c0_i32_0 = arith.constant 0 : i32
    %c0_i32_1 = arith.constant 0 : i32
    return %c0_i32, %c0_i32_0 : i32, i32
  }
  func.func @transform_3(%arg0: i32) -> (i32, i32) {
    %c0_i32 = arith.constant 0 : i32
    %c0_i32_0 = arith.constant 0 : i32
    %c0_i32_1 = arith.constant 0 : i32
    return %c0_i32, %c0_i32_0 : i32, i32
  }
  func.func @transform_4(%arg0: i32) -> (i32, i32) {
    %c0_i32 = arith.constant 0 : i32
    %c0_i32_0 = arith.constant 0 : i32
    return %arg0, %c0_i32 : i32, i32
  }
}

</mosaic_0001>

<bundles_post_ra>
// kernel: sage_gcn_forward.1
= control target key start
LH: loop header
LB: loop body
LE: loop exit
PB: predicated region body
PF: predicated region fallthrough
CT: control target
= control target key end

     0   :  { %s1600_s15 = smov 0   ;;  %s1854_s0 = inlined_call_operand.vmem [shape: bf16[512,64], index: 0, kind: input, shape index: {}]   ;;  %s1855_s1 = inlined_call_operand.vmem [shape: bf16[512,512], index: 1, kind: input, shape index: {}]   ;;  %s1856_s2 = inlined_call_operand.vmem [shape: bf16[64,32], index: 2, kind: input, shape index: {}]   ;;  %s1857_s3 = inlined_call_operand.vmem [shape: bf16[512,32], index: 3, kind: input, shape index: {}]   ;;  %s1858_s4 = inlined_call_operand.vmem [shape: f32[512,32], index: 4, kind: output, shape index: {}]  }
   0x1 LB: > { %s1196_s16 = sadd.s32 4294967295, %s1573_s15   ;;  %p1200_p0 = scmp.ge.s32.totalorder %s1573_s15, 1  ;;  %s1573_s15 = sphi %s1600_s15, %s14_s15  }
   0x2   : > { %p175_p1 = scmp.lt.s32.totalorder %s1573_s15, 5 }
   0x4   : > { %p176_p2 = pnand %p1200_p0, %p175_p1 }
   0x5   : > { %v1475_v0 = vld [vmem:[%s1857_s3 + $0x40] sm:$0xff] (!%p176_p2)   ;;  %v1479_v4 = vld [vmem:[%s1857_s3 + $0x48] sm:$0xff] (!%p176_p2)   ;;  %v1483_v8 = vld [vmem:[%s1857_s3 + $0x50] sm:$0xff] (!%p176_p2)   ;;  %s1201_s25 = sshll.u32 (!%p176_p2), %s1196_s16, 4  ;;  %vm973_vm0 = vcmask (!%p176_p2), 523264   ;;  %vm1111_vm1 = vcmask (!%p176_p2), 261120  }
   0x6   : > { %179 = sbr.rel (%p176_p2) target bundleno = 332 (0x14c), region = 36  ;;  %v1476_v1 = vld [vmem:[%s1857_s3 + $0xc0] sm:$0xff] (!%p176_p2)   ;;  %1295 = vmatprep.subr.bf16.mxu0 (!%p176_p2), %v1475_v0  ;;  %v1480_v5 = vld [vmem:[%s1857_s3 + $0xc8] sm:$0xff] (!%p176_p2)   ;;  %v1484_v9 = vld [vmem:[%s1857_s3 + $0xd0] sm:$0xff] (!%p176_p2)   ;;  %p208_p3 = scmp.lt.s32.totalorder (!%p176_p2), %s1201_s25, 63 }
   0x7   : > { %v1477_v2 = vld [vmem:[%s1857_s3] sm:$0xff] (!%p176_p2)   ;;  %1359 = vmatprep.subr.bf16.mxu1 (!%p176_p2), %v1476_v1  ;;  %v1481_v6 = vld [vmem:[%s1857_s3 + $0x8] sm:$0xff] (!%p176_p2)   ;;  %v1485_v10 = vld [vmem:[%s1857_s3 + $0x10] sm:$0xff] (!%p176_p2)  }
   0x8   : > { %v1478_v3 = vld [vmem:[%s1857_s3 + $0x80] sm:$0xff] (!%p176_p2)   ;;  %1296 = vmatpush3.bf16.msra.mxu0 (!%p176_p2), %v1477_v2  ;;  %v1482_v7 = vld [vmem:[%s1857_s3 + $0x88] sm:$0xff] (!%p176_p2)   ;;  %v1486_v11 = vld [vmem:[%s1857_s3 + $0x90] sm:$0xff] (!%p176_p2)  }
   0x9   : > { %1360 = vmatpush3.bf16.msra.mxu1 (!%p176_p2), %v1478_v3  ;;  %1297 = vmatprep.subr.bf16.mxu0 (!%p176_p2), %v1479_v4  ;;  %v1487_v12 = vld [vmem:[%s1857_s3 + $0x58] sm:$0xff] (!%p176_p2)   ;;  %v1491_v16 = vld [vmem:[%s1857_s3 + $0x60] sm:$0xff] (!%p176_p2)   ;;  %v1495_v20 = vld [vmem:[%s1857_s3 + $0x68] sm:$0xff] (!%p176_p2)  }
   0xa   : > { %1361 = vmatprep.subr.bf16.mxu1 (!%p176_p2), %v1480_v5  ;;  %v1488_v13 = vld [vmem:[%s1857_s3 + $0xd8] sm:$0xff] (!%p176_p2)   ;;  %v1492_v17 = vld [vmem:[%s1857_s3 + $0xe0] sm:$0xff] (!%p176_p2)   ;;  %v1496_v21 = vld [vmem:[%s1857_s3 + $0xe8] sm:$0xff] (!%p176_p2)  }
   0xb   : > { %v1489_v14 = vld [vmem:[%s1857_s3 + $0x18] sm:$0xff] (!%p176_p2)   ;;  %v1493_v18 = vld [vmem:[%s1857_s3 + $0x20] sm:$0xff] (!%p176_p2)   ;;  %v1497_v22 = vld [vmem:[%s1857_s3 + $0x28] sm:$0xff] (!%p176_p2)  }
   0xc   : > { %1298 = vmatpush3.bf16.msra.mxu0 (!%p176_p2), %v1481_v6  ;;  %v1490_v15 = vld [vmem:[%s1857_s3 + $0x98] sm:$0xff] (!%p176_p2)   ;;  %v1494_v19 = vld [vmem:[%s1857_s3 + $0xa0] sm:$0xff] (!%p176_p2)   ;;  %v1498_v23 = vld [vmem:[%s1857_s3 + $0xa8] sm:$0xff] (!%p176_p2)  }
   0xd   : > { %1362 = vmatpush3.bf16.msra.mxu1 %v1482_v7  ;;  %1299 = vmatprep.subr.bf16.mxu0 %v1483_v8  ;;  %s1860_s25 = smov (!%p208_p3, %s1201_s25), 63  ;;  %v1499_v24 = vld [vmem:[%s1857_s3 + $0x70] sm:$0xff]   ;;  %v1503_v28 = vld [vmem:[%s1857_s3 + $0x78] sm:$0xff]   ;;  %v1513_v36 = vld [vmem:[%s1856_s2] sm:$0xff]  }
   0xe   : > { %1363 = vmatprep.subr.bf16.mxu1 %v1484_v9  ;;  %v1500_v25 = vld [vmem:[%s1857_s3 + $0xf0] sm:$0xff]   ;;  %s1294_s23 = sshll.u32 %s1860_s25, 4  ;;  %v1504_v29 = vld [vmem:[%s1857_s3 + $0xf8] sm:$0xff]   ;;  %v1526_v42 = vld [vmem:[%s1856_s2 + $0x8] sm:$0xff]   ;;  %s1202_s19 = sshll.u32 %s1860_s25, 2 }
   0xf   : > { %v1501_v26 = vld [vmem:[%s1857_s3 + $0x30] sm:$0xff]   ;;  %s1706_s7 = scalar_lea.vmem %s1855_s1, %s1294_s23  ;;  %v1505_v30 = vld [vmem:[%s1857_s3 + $0x38] sm:$0xff]   ;;  %s1746_s24 = scalar_lea.vmem %s1854_s0, %s1202_s19 }
  0x10   : > { %1300 = vmatpush3.bf16.msra.mxu0 %v1485_v10  ;;  %v1502_v27 = vld [vmem:[%s1857_s3 + $0xb0] sm:$0xff]   ;;  %v1506_v31 = vld [vmem:[%s1857_s3 + $0xb8] sm:$0xff]   ;;  %v1559_v4 = vld [vmem:[%s1746_s24] sm:$0xff]   ;;  %s1207_s26 = sshll.u32 %s1860_s25, 3 }
  0x11   : > { %1364 = vmatpush3.bf16.msra.mxu1 %v1486_v11  ;;  %1301 = vmatprep.subr.bf16.mxu0 %v1487_v12  ;;  %v1507_v32 = vld [vmem:[%s1706_s7] ss:$16 sps:$4 sm:$0xff]   ;;  %v1509_v33 = vld [vmem:[%s1706_s7 + $0x4] ss:$16 sps:$4 sm:$0xff]   ;;  %v1510_v34 = vld [vmem:[%s1706_s7 + $0x8] ss:$16 sps:$4 sm:$0xff]   ;;  %s1809_s29 = scalar_lea.vmem %s1858_s4, %s1207_s26 }
  0x12   : > { %1365 = vmatprep.subr.bf16.mxu1 %v1488_v13  ;;  %v1512_v35 = vld [vmem:[%s1706_s7 + $0xc] ss:$16 sps:$4 sm:$0xff]   ;;  %731 = vmatprep.mubr.bf16.mxu0 %v1509_v33  ;;  %v1514_v37 = vld [vmem:[%s1706_s7 + $0x24] ss:$16 sps:$4 sm:$0xff]   ;;  %v1518_v39 = vld [vmem:[%s1706_s7 + $0x20] ss:$16 sps:$4 sm:$0xff]  }
  0x13   : > { %828 = vmatprep.mubr.bf16.mxu1 %v1512_v35  ;;  %v1516_v38 = vld [vmem:[%s1706_s7 + $0x2c] ss:$16 sps:$4 sm:$0xff]   ;;  %v1519_v40 = vld [vmem:[%s1706_s7 + $0x28] ss:$16 sps:$4 sm:$0xff]   ;;  %v1520_v41 = vld [vmem:[%s1706_s7 + $0x44] ss:$16 sps:$4 sm:$0xff]  }
  0x14   : > { %1302 = vmatpush3.bf16.msra.mxu0 %v1489_v14  ;;  %v1522_v43 = vld [vmem:[%s1706_s7 + $0x4c] ss:$16 sps:$4 sm:$0xff]   ;;  %v1524_v44 = vld [vmem:[%s1706_s7 + $0x40] ss:$16 sps:$4 sm:$0xff]   ;;  %v1525_v45 = vld [vmem:[%s1706_s7 + $0x48] ss:$16 sps:$4 sm:$0xff]  }
  0x15   : > { %1366 = vmatpush3.bf16.msra.mxu1 %v1490_v15  ;;  %1303 = vmatprep.subr.bf16.mxu0 %v1491_v16  ;;  %v1539_v46 = vld [vmem:[%s1856_s2 + $0x10] sm:$0xff]   ;;  %v1529_v48 = vld [vmem:[%s1706_s7 + $0x6c] ss:$16 sps:$4 sm:$0xff]   ;;  %v1532_v51 = vld [vmem:[%s1706_s7 + $0x68] ss:$16 sps:$4 sm:$0xff]  }
  0x16   : > { %1367 = vmatprep.subr.bf16.mxu1 %v1492_v17  ;;  %v1527_v47 = vld [vmem:[%s1706_s7 + $0x64] ss:$16 sps:$4 sm:$0xff]   ;;  %v1552_v49 = vld [vmem:[%s1856_s2 + $0x18] sm:$0xff]   ;;  %v1531_v50 = vld [vmem:[%s1706_s7 + $0x60] ss:$16 sps:$4 sm:$0xff]  }
  0x17   : > { %v1533_v52 = vld [vmem:[%s1706_s7 + $0x84] ss:$16 sps:$4 sm:$0xff]   ;;  %v1535_v53 = vld [vmem:[%s1706_s7 + $0x8c] ss:$16 sps:$4 sm:$0xff]   ;;  %v1537_v54 = vld [vmem:[%s1706_s7 + $0x80] ss:$16 sps:$4 sm:$0xff]  }
  0x18   : > { %1304 = vmatpush3.bf16.msra.mxu0 %v1493_v18  ;;  %v1538_v55 = vld [vmem:[%s1706_s7 + $0x88] ss:$16 sps:$4 sm:$0xff]   ;;  %v1540_v56 = vld [vmem:[%s1706_s7 + $0xa4] ss:$16 sps:$4 sm:$0xff]   ;;  %v1542_v57 = vld [vmem:[%s1706_s7 + $0xac] ss:$16 sps:$4 sm:$0xff]  }
  0x19   : > { %1368 = vmatpush3.bf16.msra.mxu1 %v1494_v19  ;;  %1305 = vmatprep.subr.bf16.mxu0 %v1495_v20  ;;  %v1544_v58 = vld [vmem:[%s1706_s7 + $0xa0] ss:$16 sps:$4 sm:$0xff]   ;;  %v1545_v59 = vld [vmem:[%s1706_s7 + $0xa8] ss:$16 sps:$4 sm:$0xff]   ;;  %v1546_v60 = vld [vmem:[%s1706_s7 + $0xc4] ss:$16 sps:$4 sm:$0xff]  }
  0x1a   : > { %1369 = vmatprep.subr.bf16.mxu1 %v1496_v21  ;;  %v1548_v61 = vld [vmem:[%s1706_s7 + $0xcc] ss:$16 sps:$4 sm:$0xff]   ;;  %v1550_v62 = vld [vmem:[%s1706_s7 + $0xc0] ss:$16 sps:$4 sm:$0xff]   ;;  %v1551_v63 = vld [vmem:[%s1706_s7 + $0xc8] ss:$16 sps:$4 sm:$0xff]  }
  0x1b   : > { %v1553_v0 = vld [vmem:[%s1706_s7 + $0xe4] ss:$16 sps:$4 sm:$0xff]   ;;  %v1555_v1 = vld [vmem:[%s1706_s7 + $0xec] ss:$16 sps:$4 sm:$0xff]   ;;  %v1557_v2 = vld [vmem:[%s1706_s7 + $0xe0] ss:$16 sps:$4 sm:$0xff]  }
  0x1c   : > { %1306 = vmatpush3.bf16.msra.mxu0 %v1497_v22  ;;  %v1558_v3 = vld [vmem:[%s1706_s7 + $0xe8] ss:$16 sps:$4 sm:$0xff]   ;;  %v1560_v5 = vld [vmem:[%s1746_s24 + $0x20] sm:$0xff]   ;;  %v1563_v8 = vld [vmem:[%s1746_s24 + $0x10] sm:$0xff]  }
  0x1d   : > { %1370 = vmatpush3.bf16.msra.mxu1 %v1498_v23  ;;  %1307 = vmatprep.subr.bf16.mxu0 %v1499_v24  ;;  %v1561_v6 = vld [vmem:[%s1746_s24 + $0x8] sm:$0xff]   ;;  %v1564_v9 = vld [vmem:[%s1746_s24 + $0x30] sm:$0xff]   ;;  %v1565_v10 = vld [vmem:[%s1746_s24 + $0x18] sm:$0xff]  }
  0x1e   : > { %1371 = vmatprep.subr.bf16.mxu1 %v1500_v25  ;;  %v1562_v7 = vld [vmem:[%s1746_s24 + $0x28] sm:$0xff]   ;;  %v1566_v11 = vld [vmem:[%s1746_s24 + $0x38] sm:$0xff]  }
  0x20   : > { %1308 = vmatpush3.bf16.msra.mxu0 %v1501_v26 }
  0x21   : > { %1372 = vmatpush3.bf16.msra.mxu1 %v1502_v27  ;;  %1309 = vmatprep.subr.bf16.mxu0 %v1503_v28 }
  0x22   : > { %1373 = vmatprep.subr.bf16.mxu1 %v1504_v29 }
  0x24   : > { %1310 = vmatpush3.bf16.msra.mxu0 %v1505_v30 }
  0x25   : > { %1374 = vmatpush3.bf16.msra.mxu1 %v1506_v31  ;;  %1435 = vmatprep.subr.bf16.mxu0 %v1513_v36 }
  0x26   : > { %1459 = vmatprep.subr.bf16.mxu1 %v1513_v36 }
  0x27   : > { %732 = vmatmul.mubr.bf16.vlgmr.msra.gmra.mrb[0].mxu0 %v1507_v32 }
  0x28   : > { %829 = vmatmul.mubr.bf16.vlgmr.msra.gmra.mrb[0].mxu1 %v1510_v34  ;;  %1436 = vmatpush3.bf16.msra.mxu0 %v1513_v36 }
  0x29   : > { %1463 = vmatpush3.bf16.msra.mxu1 %v1513_v36  ;;  %739 = vmatprep.mubr.bf16.mxu0 %v1514_v37 }
  0x2a   : > { %836 = vmatprep.mubr.bf16.mxu1 %v1516_v38  ;;  %1437 = vmatprep.subr.bf16.mxu0 %v1526_v42 }
  0x2b   : > { %1460 = vmatprep.subr.bf16.mxu1 %v1526_v42 }
  0x2c   : > { %1438 = vmatpush3.bf16.msra.mxu0 %v1526_v42 }
  0x2d   : > { %1464 = vmatpush3.bf16.msra.mxu1 %v1526_v42  ;;  %1439 = vmatprep.subr.bf16.mxu0 %v1539_v46 }
  0x2e   : > { %1461 = vmatprep.subr.bf16.mxu1 %v1539_v46 }
  0x2f   : > { %740 = vmatmul.mubr.bf16.gmra.mrb[4].mxu0 %v1518_v39 }
  0x30   : > { %837 = vmatmul.mubr.bf16.gmra.mrb[4].mxu1 %v1519_v40  ;;  %747 = vmatprep.mubr.bf16.mxu0 %v1520_v41 }
  0x31   : > { %844 = vmatprep.mubr.bf16.mxu1 %v1522_v43  ;;  %1440 = vmatpush3.bf16.msra.mxu0 %v1539_v46 }
  0x32   : > { %1465 = vmatpush3.bf16.msra.mxu1 %v1539_v46  ;;  %1441 = vmatprep.subr.bf16.mxu0 %v1552_v49 }
  0x33   : > { %1462 = vmatprep.subr.bf16.mxu1 %v1552_v49 }
  0x35   : > { %1442 = vmatpush3.bf16.msra.mxu0 %v1552_v49 }
  0x36   : > { %1466 = vmatpush3.bf16.msra.mxu1 %v1552_v49 }
  0x37   : > { %748 = vmatmul.mubr.bf16.gmra.mrb[8].mxu0 %v1524_v44 }
  0x38   : > { %845 = vmatmul.mubr.bf16.gmra.mrb[8].mxu1 %v1525_v45  ;;  %755 = vmatprep.mubr.bf16.mxu0 %v1527_v47 }
  0x39   : > { %852 = vmatprep.mubr.bf16.mxu1 %v1529_v48 }
  0x3f   : > { %756 = vmatmul.mubr.bf16.gmra.mrb[12].mxu0 %v1531_v50 }
  0x40   : > { %853 = vmatmul.mubr.bf16.gmra.mrb[12].mxu1 %v1532_v51  ;;  %763 = vmatprep.mubr.bf16.mxu0 %v1533_v52 }
  0x41   : > { %860 = vmatprep.mubr.bf16.mxu1 %v1535_v53 }
  0x47   : > { %764 = vmatmul.mubr.bf16.gmra.mrb[16].mxu0 %v1537_v54 }
  0x48   : > { %861 = vmatmul.mubr.bf16.gmra.mrb[16].mxu1 %v1538_v55  ;;  %771 = vmatprep.mubr.bf16.mxu0 %v1540_v56 }
  0x49   : > { %868 = vmatprep.mubr.bf16.mxu1 %v1542_v57 }
  0x4f   : > { %772 = vmatmul.mubr.bf16.gmra.mrb[20].mxu0 %v1544_v58 }
  0x50   : > { %869 = vmatmul.mubr.bf16.gmra.mrb[20].mxu1 %v1545_v59  ;;  %779 = vmatprep.mubr.bf16.mxu0 %v1546_v60 }
  0x51   : > { %876 = vmatprep.mubr.bf16.mxu1 %v1548_v61 }
  0x57   : > { %780 = vmatmul.mubr.bf16.gmra.mrb[24].mxu0 %v1550_v62 }
  0x58   : > { %877 = vmatmul.mubr.bf16.gmra.mrb[24].mxu1 %v1551_v63  ;;  %787 = vmatprep.mubr.bf16.mxu0 %v1553_v0 }
  0x59   : > { %884 = vmatprep.mubr.bf16.mxu1 %v1555_v1 }
  0x5f   : > { %788 = vmatmul.mubr.bf16.gmra.mrb[28].mxu0 %v1557_v2 }
  0x60   : > { %885 = vmatmul.mubr.bf16.gmra.mrb[28].mxu1 %v1558_v3  ;;  %1443 = vmatprep.mubr.msk.bf16.mxu0 %vm973_vm0, %v1559_v4 }
  0x61   : > { %1451 = vmatprep.mubr.msk.bf16.mxu1 %vm973_vm0, %v1560_v5 }
  0x67   : > { %1444 = vmatmul.mubr.msk.bf16.vlgmr.msra.gmra.mrb[32].mxu0 %vm973_vm0, %v1561_v6 }
  0x68   : > { %1452 = vmatmul.mubr.msk.bf16.vlgmr.msra.gmra.mrb[32].mxu1 %vm973_vm0, %v1562_v7  ;;  %1447 = vmatprep.mubr.msk.bf16.mxu0 %vm973_vm0, %v1563_v8 }
  0x69   : > { %1455 = vmatprep.mubr.msk.bf16.mxu1 %vm973_vm0, %v1564_v9 }
  0x6f   : > { %1448 = vmatmul.mubr.msk.bf16.gmra.mrb[36].mxu0 %vm973_vm0, %v1565_v10 }
  0x70   : > { %1456 = vmatmul.mubr.msk.bf16.gmra.mrb[36].mxu1 %vm973_vm0, %v1566_v11 }
  0xfa   : > { %v1311_v12 = vpop.f32.mrb[0].mxu0 }
  0xfb   : > { %v1375_v13 = vpop.f32.mrb[0].mxu1  ;;  %v1312_v14 = vpop.f32.mrb[1].mxu0 }
  0xfc   : > { %v1313_v15 = vadd.f32 %v1312_v14, %v1311_v12  ;;  %v1376_v16 = vpop.f32.mrb[1].mxu1  ;;  %v1314_v17 = vpop.f32.mrb[2].mxu0 }
  0xfd   : > { %v1377_v18 = vadd.f32 %v1376_v16, %v1375_v13  ;;  %v1378_v19 = vpop.f32.mrb[2].mxu1  ;;  %v1315_v20 = vpop.f32.mrb[3].mxu0 }
  0xfe   : > { %v1316_v21 = vadd.f32 %v1315_v20, %v1314_v17  ;;  %v1379_v22 = vpop.f32.mrb[3].mxu1 }
  0xff   : > { %v1780_v23 = vadd.f32 %v1377_v18, %v1313_v15  ;;  %v1380_v24 = vadd.f32 %v1379_v22, %v1378_v19 }
 0x101   : > { %v1782_v25 = vadd.f32 %v1380_v24, %v1316_v21 }
 0x102   : > { %v1317_v26 = vpop.f32.mrb[4].mxu0 }
 0x103   : > { %v1381_v27 = vpop.f32.mrb[4].mxu1  ;;  %v1318_v28 = vpop.f32.mrb[5].mxu0 }
 0x104   : > { %v1319_v29 = vadd.f32 %v1318_v28, %v1317_v26  ;;  %v1382_v30 = vpop.f32.mrb[5].mxu1  ;;  %v1320_v31 = vpop.f32.mrb[6].mxu0 }
 0x105   : > { %v1383_v32 = vadd.f32 %v1382_v30, %v1381_v27  ;;  %v1384_v33 = vpop.f32.mrb[6].mxu1  ;;  %v1321_v34 = vpop.f32.mrb[7].mxu0 }
 0x106   : > { %v1322_v35 = vadd.f32 %v1321_v34, %v1320_v31  ;;  %v1385_v36 = vpop.f32.mrb[7].mxu1 }
 0x107   : > { %v1784_v37 = vadd.f32 %v1383_v32, %v1319_v29  ;;  %v1386_v38 = vadd.f32 %v1385_v36, %v1384_v33 }
 0x109   : > { %v1786_v39 = vadd.f32 %v1386_v38, %v1322_v35 }
 0x10a   : > { %v1323_v40 = vpop.f32.mrb[8].mxu0 }
 0x10b   : > { %v1387_v41 = vpop.f32.mrb[8].mxu1  ;;  %v1324_v42 = vpop.f32.mrb[9].mxu0 }
 0x10c   : > { %v1325_v43 = vadd.f32 %v1324_v42, %v1323_v40  ;;  %v1388_v44 = vpop.f32.mrb[9].mxu1  ;;  %v1326_v45 = vpop.f32.mrb[10].mxu0 }
 0x10d   : > { %v1389_v46 = vadd.f32 %v1388_v44, %v1387_v41  ;;  %v1390_v47 = vpop.f32.mrb[10].mxu1  ;;  %v1327_v48 = vpop.f32.mrb[11].mxu0 }
 0x10e   : > { %v1328_v49 = vadd.f32 %v1327_v48, %v1326_v45  ;;  %v1391_v50 = vpop.f32.mrb[11].mxu1 }
 0x10f   : > { %v1788_v51 = vadd.f32 %v1389_v46, %v1325_v43  ;;  %v1392_v52 = vadd.f32 %v1391_v50, %v1390_v47 }
 0x111   : > { %v1790_v53 = vadd.f32 %v1392_v52, %v1328_v49 }
 0x112   : > { %v1329_v54 = vpop.f32.mrb[12].mxu0 }
 0x113   : > { %v1393_v55 = vpop.f32.mrb[12].mxu1  ;;  %v1330_v56 = vpop.f32.mrb[13].mxu0 }
 0x114   : > { %v1331_v57 = vadd.f32 %v1330_v56, %v1329_v54  ;;  %v1394_v58 = vpop.f32.mrb[13].mxu1  ;;  %v1332_v59 = vpop.f32.mrb[14].mxu0 }
 0x115   : > { %v1395_v60 = vadd.f32 %v1394_v58, %v1393_v55  ;;  %v1396_v61 = vpop.f32.mrb[14].mxu1  ;;  %v1333_v62 = vpop.f32.mrb[15].mxu0 }
 0x116   : > { %v1334_v63 = vadd.f32 %v1333_v62, %v1332_v59  ;;  %v1397_v0 = vpop.f32.mrb[15].mxu1 }
 0x117   : > { %v1792_v1 = vadd.f32 %v1395_v60, %v1331_v57  ;;  %v1398_v2 = vadd.f32 %v1397_v0, %v1396_v61 }
 0x119   : > { %v1794_v3 = vadd.f32 %v1398_v2, %v1334_v63 }
 0x11a   : > { %v1335_v4 = vpop.f32.mrb[16].mxu0 }
 0x11b   : > { %v1399_v5 = vpop.f32.mrb[16].mxu1  ;;  %v1336_v6 = vpop.f32.mrb[17].mxu0 }
 0x11c   : > { %v1337_v7 = vadd.f32 %v1336_v6, %v1335_v4  ;;  %v1400_v8 = vpop.f32.mrb[17].mxu1  ;;  %v1338_v9 = vpop.f32.mrb[18].mxu0  ;;  %v895_v4 = vmul.f32 0.125, %v1784_v37 }
 0x11d   : > { %v1401_v10 = vadd.f32 %v1400_v8, %v1399_v5  ;;  %v1402_v11 = vpop.f32.mrb[18].mxu1  ;;  %v1339_v12 = vpop.f32.mrb[19].mxu0 }
 0x11e   : > { %v1340_v13 = vadd.f32 %v1339_v12, %v1338_v9  ;;  %v1403_v14 = vpop.f32.mrb[19].mxu1  ;;  %v896_v12 = vmul.f32 0.125, %v1786_v39 }
 0x11f   : > { %v863_v15 = vadd.f32 %v1401_v10, %v1337_v7  ;;  %v1404_v16 = vadd.f32 %v1403_v14, %v1402_v11  ;;  %v893_v7 = vmul.f32 0.125, %v1780_v23  ;;  %v894_v23 = vmul.f32 0.125, %v1782_v25 }
 0x121   : > { %v1796_v17 = vadd.f32 %v1404_v16, %v1340_v13  ;;  %v901_v11 = vmul.f32 0.125, %v863_v15 }
 0x122   : > { %v1341_v18 = vpop.f32.mrb[20].mxu0 }
 0x123   : > { %v1405_v19 = vpop.f32.mrb[20].mxu1  ;;  %v1342_v20 = vpop.f32.mrb[21].mxu0 }
 0x124   : > { %v1343_v21 = vadd.f32 %v1342_v20, %v1341_v18  ;;  %v1406_v22 = vpop.f32.mrb[21].mxu1  ;;  %v1344_v24 = vpop.f32.mrb[22].mxu0 }
 0x125   : > { %v1407_v26 = vadd.f32 %v1406_v22, %v1405_v19  ;;  %v1408_v27 = vpop.f32.mrb[22].mxu1  ;;  %v1345_v28 = vpop.f32.mrb[23].mxu0  ;;  %v902_v22 = vmul.f32 0.125, %v1796_v17 }
 0x126   : > { %v1346_v29 = vadd.f32 %v1345_v28, %v1344_v24  ;;  %v1409_v30 = vpop.f32.mrb[23].mxu1 }
 0x127   : > { %v871_v31 = vadd.f32 %v1407_v26, %v1343_v21  ;;  %v1410_v32 = vadd.f32 %v1409_v30, %v1408_v27 }
 0x129   : > { %v874_v33 = vadd.f32 %v1410_v32, %v1346_v29  ;;  %v903_v6 = vmul.f32 0.125, %v871_v31 }
 0x12a   : > { %v1347_v34 = vpop.f32.mrb[24].mxu0 }
 0x12b   : > { %v1411_v35 = vpop.f32.mrb[24].mxu1  ;;  %v1348_v36 = vpop.f32.mrb[25].mxu0  ;;  %v904_v18 = vmul.f32 0.125, %v874_v33 }
 0x12c   : > { %v1349_v38 = vadd.f32 %v1348_v36, %v1347_v34  ;;  %v1412_v40 = vpop.f32.mrb[25].mxu1  ;;  %v1350_v41 = vpop.f32.mrb[26].mxu0  ;;  %v899_v34 = vmul.f32 0.125, %v1792_v1 }
 0x12d   : > { %v1413_v42 = vadd.f32 %v1412_v40, %v1411_v35  ;;  %v1414_v43 = vpop.f32.mrb[26].mxu1  ;;  %v1351_v44 = vpop.f32.mrb[27].mxu0 }
 0x12e   : > { %v1352_v45 = vadd.f32 %v1351_v44, %v1350_v41  ;;  %v1415_v46 = vpop.f32.mrb[27].mxu1  ;;  %v900_v44 = vmul.f32 0.125, %v1794_v3 }
 0x12f   : > { %v1798_v47 = vadd.f32 %v1413_v42, %v1349_v38  ;;  %v1416_v48 = vadd.f32 %v1415_v46, %v1414_v43  ;;  %v897_v38 = vmul.f32 0.125, %v1788_v51 }
 0x131   : > { %v1800_v49 = vadd.f32 %v1416_v48, %v1352_v45  ;;  %v905_v43 = vmul.f32 0.125, %v1798_v47 }
 0x132   : > { %v1353_v50 = vpop.f32.mrb[28].mxu0 }
 0x133   : > { %v1417_v52 = vpop.f32.mrb[28].mxu1  ;;  %v1354_v54 = vpop.f32.mrb[29].mxu0  ;;  %v906_v47 = vmul.f32 0.125, %v1800_v49 }
 0x134   : > { %v1355_v55 = vadd.f32 %v1354_v54, %v1353_v50  ;;  %v1418_v56 = vpop.f32.mrb[29].mxu1  ;;  %v1356_v57 = vpop.f32.mrb[30].mxu0 }
 0x135   : > { %v1419_v58 = vadd.f32 %v1418_v56, %v1417_v52  ;;  %v1420_v59 = vpop.f32.mrb[30].mxu1  ;;  %v1357_v60 = vpop.f32.mrb[31].mxu0  ;;  %v898_v52 = vmul.f32 0.125, %v1790_v53 }
 0x136   : > { %v1358_v61 = vadd.f32 %v1357_v60, %v1356_v57  ;;  %v1421_v62 = vpop.f32.mrb[31].mxu1 }
 0x137   : > { %v887_v63 = vadd.f32 %v1419_v58, %v1355_v55  ;;  %v1422_v0 = vadd.f32 %v1421_v62, %v1420_v59 }
 0x139   : > { %v890_v2 = vadd.f32 %v1422_v0, %v1358_v61  ;;  %v907_v36 = vmul.f32 0.125, %v887_v63 }
 0x13a   : > { %v1445_v5 = vpop.f32.mrb[32].mxu0 }
 0x13b   : > { %v1041_v8 = vadd.f32 %v1445_v5, %v895_v4  ;;  %v1453_v9 = vpop.f32.mrb[32].mxu1  ;;  %v1032_v10 = vpop.f32.mrb[33].mxu0  ;;  %v908_v50 = vmul.f32 0.125, %v890_v2 }
 0x13c   : > { %v1073_v13 = vadd.f32 %v1453_v9, %v903_v6  ;;  %v1033_v14 = vadd.f32 %v1032_v10, %v893_v7  ;;  %v1064_v37 = vpop.f32.mrb[33].mxu1  ;;  %v1446_v16 = vpop.f32.mrb[34].mxu0 }
 0x13d   : > { %v1097_v19 = vmax.f32 %v1041_v8, 0.0  ;;  %v1065_v20 = vadd.f32 %v1064_v37, %v901_v11  ;;  %v1044_v15 = vadd.f32 %v1446_v16, %v896_v12  ;;  %v1454_v21 = vpop.f32.mrb[34].mxu1  ;;  %v1035_v39 = vpop.f32.mrb[35].mxu0 }
 0x13e   : > { %v1105_v24 = vmax.f32 %v1073_v13, 0.0  ;;  %v1095_v26 = vmax.f32 %v1033_v14, 0.0  ;;  %v1076_v27 = vadd.f32 %v1454_v21, %v904_v18  ;;  %v1036_v28 = vadd.f32 %v1035_v39, %v894_v23  ;;  %v1067_v29 = vpop.f32.mrb[35].mxu1 }
 0x13f   : > { %1114 = vst.msk [vmem:[%s1809_s29 + $0x10] sm:$0xff] %vm1111_vm1, %v1097_v19  ;;  %v1103_v25 = vmax.f32 %v1065_v20, 0.0  ;;  %v1098_v30 = vmax.f32 %v1044_v15, 0.0  ;;  %v1068_v31 = vadd.f32 %v1067_v29, %v902_v22 }
 0x140   : > { %1122 = vst.msk [vmem:[%s1809_s29 + $0x50] sm:$0xff] %vm1111_vm1, %v1105_v24  ;;  %1112 = vst.msk [vmem:[%s1809_s29] sm:$0xff] %vm1111_vm1, %v1095_v26  ;;  %v1106_v32 = vmax.f32 %v1076_v27, 0.0  ;;  %v1096_v33 = vmax.f32 %v1036_v28, 0.0 }
 0x141   : > { %1120 = vst.msk [vmem:[%s1809_s29 + $0x40] sm:$0xff] %vm1111_vm1, %v1103_v25  ;;  %1115 = vst.msk [vmem:[%s1809_s29 + $0x18] sm:$0xff] %vm1111_vm1, %v1098_v30  ;;  %v1104_v17 = vmax.f32 %v1068_v31, 0.0 }
 0x142   : > { %1123 = vst.msk [vmem:[%s1809_s29 + $0x58] sm:$0xff] %vm1111_vm1, %v1106_v32  ;;  %1113 = vst.msk [vmem:[%s1809_s29 + $0x8] sm:$0xff] %vm1111_vm1, %v1096_v33  ;;  %v1449_v35 = vpop.f32.mrb[36].mxu0 }
 0x143   : > { %1121 = vst.msk [vmem:[%s1809_s29 + $0x48] sm:$0xff] %vm1111_vm1, %v1104_v17  ;;  %v1057_v40 = vadd.f32 %v1449_v35, %v899_v34  ;;  %v1457_v41 = vpop.f32.mrb[36].mxu1  ;;  %v1048_v42 = vpop.f32.mrb[37].mxu0 }
 0x144   : > { %v1089_v45 = vadd.f32 %v1457_v41, %v907_v36  ;;  %v1049_v46 = vadd.f32 %v1048_v42, %v897_v38  ;;  %v1080_v1 = vpop.f32.mrb[37].mxu1  ;;  %v1450_v48 = vpop.f32.mrb[38].mxu0 }
 0x145   : > { %v1101_v54 = vmax.f32 %v1057_v40, 0.0  ;;  %v1081_v51 = vadd.f32 %v1080_v1, %v905_v43  ;;  %v1060_v55 = vadd.f32 %v1450_v48, %v900_v44  ;;  %v1458_v56 = vpop.f32.mrb[38].mxu1  ;;  %v1051_v57 = vpop.f32.mrb[39].mxu0 }
 0x146   : > { %v1109_v3 = vmax.f32 %v1089_v45, 0.0  ;;  %v1099_v58 = vmax.f32 %v1049_v46, 0.0  ;;  %v1092_v59 = vadd.f32 %v1458_v56, %v908_v50  ;;  %v1052_v60 = vadd.f32 %v1051_v57, %v898_v52  ;;  %v1083_v61 = vpop.f32.mrb[39].mxu1 }
 0x147   : > { %1118 = vst.msk [vmem:[%s1809_s29 + $0x30] sm:$0xff] %vm1111_vm1, %v1101_v54  ;;  %v1107_v53 = vmax.f32 %v1081_v51, 0.0  ;;  %v1102_v62 = vmax.f32 %v1060_v55, 0.0  ;;  %v1084_v63 = vadd.f32 %v1083_v61, %v906_v47 }
 0x148   : > { %1126 = vst.msk [vmem:[%s1809_s29 + $0x70] sm:$0xff] %vm1111_vm1, %v1109_v3  ;;  %1116 = vst.msk [vmem:[%s1809_s29 + $0x20] sm:$0xff] %vm1111_vm1, %v1099_v58  ;;  %v1110_v0 = vmax.f32 %v1092_v59, 0.0  ;;  %v1100_v2 = vmax.f32 %v1052_v60, 0.0 }
 0x149   : > { %1124 = vst.msk [vmem:[%s1809_s29 + $0x60] sm:$0xff] %vm1111_vm1, %v1107_v53  ;;  %1119 = vst.msk [vmem:[%s1809_s29 + $0x38] sm:$0xff] %vm1111_vm1, %v1102_v62  ;;  %v1108_v49 = vmax.f32 %v1084_v63, 0.0 }
 0x14a   : > { %1127 = vst.msk [vmem:[%s1809_s29 + $0x78] sm:$0xff] %vm1111_vm1, %v1110_v0  ;;  %1117 = vst.msk [vmem:[%s1809_s29 + $0x28] sm:$0xff] %vm1111_vm1, %v1100_v2 }
 0x14b   : > { %1125 = vst.msk [vmem:[%s1809_s29 + $0x68] sm:$0xff] %vm1111_vm1, %v1108_v49 }
 0x14c PF: > { %s14_s15 = sadd.s32 1, %s1573_s15  }
 0x14d   : > { %p11_p4 = scmp.ge.s32.totalorder %s14_s15, 6  }
 0x14f   :  { %13 = sbr.rel (!%p11_p4) target bundleno = 1 (0x1), region = 69 }

</bundles_post_ra>
